<compile_context>
chip_gen: v7x
topology: tpu7x:2x2x1
jax: 0.10.0
libtpu: 0.0.40
codegen_flags: <defaults>
</compile_context>

<pallas_src>
import functools

import jax
import jax.numpy as jnp
import numpy as np
from jax.experimental import pallas as pl
from jax.experimental.pallas import tpu as pltpu


def _round_up(x, m):
    return ((x + m - 1) // m) * m


# ------------------------------------------------------------------ kernels

def _linear_kernel_fused_k(x_ref, w_ref, b_ref, o_ref):
    # x_ref: (TM, F)      flattened-input tile (full-extent K block)
    # w_ref: (F, N_pad)   transposed, lane-padded weight (resident, 1 buffer)
    # b_ref: (1, N_pad)   lane-padded bias row (resident, 1 buffer)
    acc = jnp.dot(x_ref[...], w_ref[...], preferred_element_type=jnp.float32)
    o_ref[...] = (acc + b_ref[...]).astype(o_ref.dtype)


def _make_linear_kernel_tiled_k(in_features, k_tile):
    """Large-F path: K tiled across an innermost 'arbitrary' grid axis."""
    ragged_k = (in_features % k_tile) != 0

    def kernel(x_ref, w_ref, b_ref, o_ref, acc_ref):
        k = pl.program_id(1)

        @pl.when(k == 0)
        def _():
            acc_ref[...] = jnp.zeros_like(acc_ref)

        x = x_ref[...]
        if ragged_k:
            # The last K block reads past in_features (stale VMEM); zero those
            # columns.  The weight's padded K rows are exact zeros from prep.
            col = jax.lax.broadcasted_iota(jnp.int32, x.shape, 1)
            x = jnp.where(col < (in_features - k * k_tile), x,
                          jnp.zeros_like(x))
        acc_ref[...] += jnp.dot(x, w_ref[...],
                                preferred_element_type=jnp.float32)

        @pl.when(k == pl.num_programs(1) - 1)
        def _():
            o_ref[...] = (acc_ref[...] + b_ref[...]).astype(o_ref.dtype)

    return kernel


# --------------------------------------------------------- parameter prep

def prepare_classifier_params(weight, bias, *, input_dtype=jnp.float32,
                              max_fused_k=4096, k_tile=1024):
    """One-time prep (outside the per-call hot path).

    weight: (out_features, in_features)  -- PyTorch nn.Linear layout.
    bias:   (out_features,)
    Returns (w_prepped, b_prepped, meta_kwargs_for_forward).
    """
    out_features, in_features = weight.shape
    n_pad = _round_up(out_features, 128)
    if in_features <= max_fused_k:
        tk = in_features                    # single full-extent K block
        k_pad = in_features
    else:
        tk = k_tile                         # multiple of 128
        k_pad = _round_up(in_features, tk)

    w = jnp.transpose(weight).astype(input_dtype)          # (F, Nout)
    w = jnp.pad(w, ((0, k_pad - in_features), (0, n_pad - out_features)))
    b = jnp.pad(bias.astype(jnp.float32), (0, n_pad - out_features))
    b = b.reshape(1, n_pad)
    meta = dict(in_features=in_features, out_features=out_features,
                k_tile=tk, input_dtype=input_dtype)
    return w, b, meta


# ----------------------------------------------------------------- forward

_VMEM_BUDGET = 32 * 1024 * 1024     # tile-sizing budget (fits v5e/v6e/v7x)
_VMEM_LIMIT = 48 * 1024 * 1024      # scoped limit (headroom under v7x 64 MiB)
_TM_CAP = 512                       # max rows per M tile


def classifier_forward(x, w, b, *, in_features, out_features, k_tile,
                       input_dtype=jnp.float32):
    """out = flatten(x) @ W^T + bias, using prepped (w, b) from
    prepare_classifier_params.  Hot path: reshape -> pallas_call -> slice."""
    n = x.shape[0]
    f = int(np.prod(x.shape[1:]))
    assert f == in_features, f"flattened features {f} != in_features {in_features}"
    k_pad, n_pad = w.shape
    num_k = k_pad // k_tile
    tiled_k = num_k > 1

    x_flat = x.reshape(n, f)
    if x_flat.dtype != input_dtype:
        x_flat = x_flat.astype(input_dtype)
    in_isz = jnp.dtype(input_dtype).itemsize

    # ---- pick the M tile under an explicit VMEM budget ----
    if tiled_k:
        # x (double buf) + out (double buf) + f32 accumulator, per row
        per_row = 2 * k_tile * in_isz + 3 * n_pad * 4
        fixed = 2 * k_tile * n_pad * in_isz + n_pad * 4     # w (double) + bias
    else:
        per_row = 2 * k_tile * in_isz + 2 * n_pad * 4       # x (double) + out
        fixed = k_tile * n_pad * in_isz + n_pad * 4         # w (single) + bias
    tm_vmem = max(8, ((_VMEM_BUDGET - fixed) // per_row) // 8 * 8)
    tm_cap = min(_TM_CAP, tm_vmem)
    if n <= tm_cap:
        tm, nm = n, 1                      # full-dim block, single grid step
    else:
        nm = pl.cdiv(n, tm_cap)
        tm = _round_up(pl.cdiv(n, nm), 8)  # balanced 8-aligned tiles
        nm = pl.cdiv(n, tm)                # ragged last block handled by Pallas

    cost = pl.CostEstimate(
        flops=2 * n * f * n_pad,
        transcendentals=0,
        bytes_accessed=in_isz * (n * f + k_pad * n_pad) + 4 * (n * n_pad + n_pad),
    )

    if not tiled_k:
        grid = (nm,)
        in_specs = [
            pl.BlockSpec((tm, f), lambda m: (m, 0)),
            pl.BlockSpec((k_pad, n_pad), lambda m: (0, 0),
                         pipeline_mode=pl.Buffered(1)),
            pl.BlockSpec((1, n_pad), lambda m: (0, 0),
                         pipeline_mode=pl.Buffered(1)),
        ]
        out_spec = pl.BlockSpec((tm, n_pad), lambda m: (m, 0))
        kernel = _linear_kernel_fused_k
        scratch = ()
        dim_sem = ("parallel",)
    else:
        grid = (nm, num_k)
        in_specs = [
            pl.BlockSpec((tm, k_tile), lambda m, k: (m, k)),
            pl.BlockSpec((k_tile, n_pad), lambda m, k: (k, 0)),
            pl.BlockSpec((1, n_pad), lambda m, k: (0, 0),
                         pipeline_mode=pl.Buffered(1)),
        ]
        out_spec = pl.BlockSpec((tm, n_pad), lambda m, k: (m, 0))
        kernel = _make_linear_kernel_tiled_k(f, k_tile)
        scratch = (pltpu.VMEM((tm, n_pad), jnp.float32),)
        dim_sem = ("parallel", "arbitrary")

    out = pl.pallas_call(
        kernel,
        out_shape=jax.ShapeDtypeStruct((n, n_pad), jnp.float32),
        grid=grid,
        in_specs=in_specs,
        out_specs=out_spec,
        scratch_shapes=scratch,
        compiler_params=pltpu.CompilerParams(
            dimension_semantics=dim_sem,
            vmem_limit_bytes=_VMEM_LIMIT),
        cost_estimate=cost,
    )(x_flat, w, b)

    return out[:, :out_features]


def _reference(x, weight, bias):
    return x.reshape(x.shape[0], -1) @ weight.T + bias


if __name__ == "__main__":
    # Classifier(in_channels=4, out_channels=10, multiplier=4):
    #   input (N, 4, 4, 4) -> Flatten -> (N, 64) -> Linear(64 -> 10).
    batch, in_channels, multiplier, out_channels = 2, 4, 4, 10
    in_features = in_channels * multiplier ** 2

    key = jax.random.PRNGKey(0)
    kx, kw, kb = jax.random.split(key, 3)

    x = jax.random.normal(kx, (batch, in_channels, multiplier, multiplier),
                          jnp.float32)
    bound = 1.0 / np.sqrt(in_features)
    weight = jax.random.uniform(kw, (out_channels, in_features), jnp.float32,
                                minval=-bound, maxval=bound)
    bias = jax.random.uniform(kb, (out_channels,), jnp.float32,
                              minval=-bound, maxval=bound)

    # One-time parameter prep (transpose + lane-pad) outside the hot path.
    w_prep, b_prep, meta = prepare_classifier_params(weight, bias)

    # Jitted hot path: reshape -> pallas_call -> slice only.
    fwd = jax.jit(functools.partial(classifier_forward, **meta))
    out = jax.block_until_ready(fwd(x, w_prep, b_prep))

    ref = _reference(x, weight, bias)
    np.testing.assert_allclose(np.asarray(out), np.asarray(ref),
                               rtol=1e-5, atol=1e-5)
    assert out.shape == (batch, out_channels)
    print("KERNEL_OK")
</pallas_src>

<mosaic_0001>
module attributes {stable_mosaic.version = 11 : i64} {
  func.func @_linear_kernel_fused_k(%arg0: i32, %arg1: memref<2x64xf32, #tpu.memory_space<vmem>>, %arg2: memref<64x128xf32, #tpu.memory_space<vmem>>, %arg3: memref<1x128xf32, #tpu.memory_space<vmem>>, %arg4: memref<2x128xf32, #tpu.memory_space<vmem>>) attributes {dimension_semantics = [#tpu.dimension_semantics<parallel>], iteration_bounds = array<i64: 1>, scalar_prefetch = 0 : i64, scratch_operands = 0 : i64, tpu.core_type = #tpu.core_type<tc>, window_params = [{transform_indices = @transform_0, window_bounds = array<i64: 2, 64>}, {pipeline_mode = #tpu.pipeline_mode<synchronous>, transform_indices = @transform_1, window_bounds = array<i64: 64, 128>}, {pipeline_mode = #tpu.pipeline_mode<synchronous>, transform_indices = @transform_2, window_bounds = array<i64: 1, 128>}, {transform_indices = @transform_3, window_bounds = array<i64: 2, 128>}]} {
    %c0 = arith.constant 0 : index
    %c0_0 = arith.constant 0 : index
    %0 = vector.load %arg1[%c0, %c0_0] : memref<2x64xf32, #tpu.memory_space<vmem>>, vector<2x64xf32>
    %c0_1 = arith.constant 0 : index
    %c0_2 = arith.constant 0 : index
    %1 = vector.load %arg2[%c0_1, %c0_2] : memref<64x128xf32, #tpu.memory_space<vmem>>, vector<64x128xf32>
    %cst = arith.constant dense<0.000000e+00> : vector<2x128xf32>
    %2 = tpu.matmul %0, %1, %cst {dimension_numbers = #tpu.dot_dimension_numbers<[1], [0], [0], [1], [0, 0, 1, 1], [], []>} : vector<2x64xf32>, vector<64x128xf32>, vector<2x128xf32> -> vector<2x128xf32>
    %c0_3 = arith.constant 0 : index
    %c0_4 = arith.constant 0 : index
    %3 = vector.load %arg3[%c0_3, %c0_4] : memref<1x128xf32, #tpu.memory_space<vmem>>, vector<1x128xf32>
    %4 = vector.broadcast %3 : vector<1x128xf32> to vector<2x128xf32>
    %5 = arith.addf %2, %4 : vector<2x128xf32>
    %c0_5 = arith.constant 0 : index
    %c0_6 = arith.constant 0 : index
    %6 = vector.load %arg4[%c0_5, %c0_6] : memref<2x128xf32, #tpu.memory_space<vmem>>, vector<2x128xf32>
    tpu.vector_store %arg4[%c0_5, %c0_6], %5 {strides = array<i32>} : memref<2x128xf32, #tpu.memory_space<vmem>>, vector<2x128xf32>,
    return
  }
  func.func @transform_0(%arg0: i32) -> (i32, i32) {
    %c0_i32 = arith.constant 0 : i32
    %c0_i32_0 = arith.constant 0 : i32
    return %arg0, %c0_i32 : i32, i32
  }
  func.func @transform_1(%arg0: i32) -> (i32, i32) {
    %c0_i32 = arith.constant 0 : i32
    %c0_i32_0 = arith.constant 0 : i32
    %c0_i32_1 = arith.constant 0 : i32
    return %c0_i32, %c0_i32_0 : i32, i32
  }
  func.func @transform_2(%arg0: i32) -> (i32, i32) {
    %c0_i32 = arith.constant 0 : i32
    %c0_i32_0 = arith.constant 0 : i32
    %c0_i32_1 = arith.constant 0 : i32
    return %c0_i32, %c0_i32_0 : i32, i32
  }
  func.func @transform_3(%arg0: i32) -> (i32, i32) {
    %c0_i32 = arith.constant 0 : i32
    %c0_i32_0 = arith.constant 0 : i32
    return %arg0, %c0_i32 : i32, i32
  }
}

</mosaic_0001>

<bundles_post_ra>
// kernel: classifier_forward.1
= control target key start
LH: loop header
LB: loop body
LE: loop exit
PB: predicated region body
PF: predicated region fallthrough
CT: control target
= control target key end

     0   :  { %8 = vsyncpa [#allocation3], 0  ;;  %s289_s0 = inlined_call_operand.vmem [shape: f32[2,64], index: 0, kind: input, shape index: {}]   ;;  %s290_s1 = inlined_call_operand.hbm [shape: f32[64,128], index: 1, kind: input, shape index: {}]   ;;  %s291_s2 = inlined_call_operand.vmem [shape: f32[1,128], index: 2, kind: input, shape index: {}]   ;;  %s292_s3 = inlined_call_operand.hbm [shape: f32[2,128], index: 3, kind: output, shape index: {}]  }
   0x1   :  { %9 = vsyncpa [#allocation4], 0  ;;  %s232_s12 = smov [#allocation2]   ;;  %s184_s16 = scalar_lea.hbm %s290_s1, 1024 }
   0x2   :  { %s17_s13 = sshll.u32 %s232_s12, 4  ;;  %p185_p0 = scmp.ne.s32.totalorder %s290_s1, %s184_s16  ;;  %s18_s13 = int_to_ptr.vmem [resolvable:$true] %s17_s13 }
   0x3   :  { %p188_p1 = scmp.lt.u32.totalorder %s184_s16, %s290_s1 }
   0x5   :  { %p190_p2 = pnand %p188_p1, %p185_p0 }
   0x7   :  { %193 = shalt.err (!%p190_p2)
}
   0x8   :  { %s194_s21 = scalar_lea.vmem %s18_s13, 1024  ;;  %p199_p4 = scmp.lt.s32.totalorder %s18_s13, %s18_s13 }
   0x9   :  { %p195_p3 = scmp.ne.s32.totalorder %s18_s13, %s194_s21  ;;  %p200_p5 = scmp.lt.s32.totalorder %s194_s21, %s194_s21 }
   0xb   :  { %p201_p6 = por %p200_p5, %p199_p4 }
   0xd   :  { %p202_p7 = pnand %p201_p6, %p195_p3 }
   0xf   :  { %205 = shalt.err (!%p202_p7)
}
  0x10   :  { %s233_s22 = smov 128   ;;  %s234_s23 = smov 8  }
  0x11   :  { %23 = dma.hbm_to_vmem [thread:$0]  %s290_s1, 1024, %s18_s13, [#allocation3], %s233_s22, %s233_s22, %s234_s23  }
  0x12   :  { %228 = dma.done.wait [#allocation3], 1024  }
  0x13   :  { %229 = vsyncadd [#allocation3], 4294966272  ;;  %v235_v0 = vmov 0.0|0.0   ;;  %vm236_vm0 = vmmov 0   ;;  %v237_v1 = vmov 0.0   ;;  %v30_v2 = vld [vmem:[#allocation2] sm:$0xff] }
  0x14   :  { %165 = vmatprep.subr.bf16.mxu0 %v235_v0  ;;  %162 = vmatprep.mubr.msk.f32.mxu0 %vm236_vm0, %v237_v1  ;;  %v31_v3 = vld [vmem:[#allocation2 + $0x8] sm:$0xff]  ;;  %v32_v4 = vld [vmem:[#allocation2 + $0x10] sm:$0xff]  ;;  %v33_v6 = vld [vmem:[#allocation2 + $0x18] sm:$0xff]  ;;  %vm45_vm1 = vcmask 523264   ;;  %s238_s29 = smov [#allocation5]  }
  0x15   :  { %v166_v5 = vpack.c.bf16 %v31_v3, %v30_v2  ;;  %v169_v7 = vpack.c.bf16 %v33_v6, %v32_v4  ;;  %v34_v8 = vld [vmem:[#allocation2 + $0x20] sm:$0xff]  ;;  %v35_v9 = vld [vmem:[#allocation2 + $0x28] sm:$0xff]  ;;  %v36_v11 = vld [vmem:[#allocation2 + $0x30] sm:$0xff]  ;;  %s126_s30 = sshll.u32 %s238_s29, 4  ;;  %s127_s30 = int_to_ptr.vmem [resolvable:$true] %s126_s30 }
  0x16   :  { %v172_v10 = vpack.c.bf16 %v35_v9, %v34_v8  ;;  %v37_v12 = vld [vmem:[#allocation2 + $0x38] sm:$0xff]  ;;  %v29_v14 = vld [vmem:[%s289_s0] sm:$0x3]  ;;  %s206_s4 = scalar_lea.vmem %s127_s30, 32  ;;  %p211_p9 = scmp.lt.s32.totalorder %s127_s30, %s127_s30 }
  0x17   :  { %167 = vmatpush3.bf16.msra.mxu0 %v166_v5  ;;  %v175_v13 = vpack.c.bf16 %v37_v12, %v36_v11  ;;  %v135_v15 = vld [vmem:[%s291_s2] ss:$0 sm:$0xff]  ;;  %p207_p8 = scmp.ne.s32.totalorder %s127_s30, %s206_s4  ;;  %p212_p10 = scmp.lt.s32.totalorder %s206_s4, %s206_s4 }
  0x18   :  { %168 = vmatprep.subr.bf16.mxu0 %v235_v0 }
  0x19   :  { %p213_p11 = por %p212_p10, %p211_p9 }
  0x1b   :  { %170 = vmatpush3.bf16.msra.mxu0 %v169_v7  ;;  %p214_p12 = pnand %p213_p11, %p207_p8 }
  0x1c   :  { %171 = vmatprep.subr.bf16.mxu0 %v235_v0 }
  0x1f   :  { %173 = vmatpush3.bf16.msra.mxu0 %v172_v10 }
  0x20   :  { %174 = vmatprep.subr.bf16.mxu0 %v235_v0 }
  0x23   :  { %176 = vmatpush3.bf16.msra.mxu0 %v175_v13 }
  0x26   :  { %163 = vmatmul.mubr.msk.f32.vlgmr.msra.gmra.mrb[0].mxu0 %vm45_vm1, %v29_v14 }
  0xf9   :  { %v115_v16 = vpop.f32.mrb[0].mxu0 }
  0xfa   :  { %v116_v17 = vadd.f32 %v135_v15, %v115_v16  ;;  %v164_v18 = vpop.f32.mrb[1].mxu0 }
  0xfc   :  { %119 = vst [vmem:[#allocation5] sm:$0x3] %v116_v17 }
  0xfd   :  { %217 = shalt.err (!%p214_p12)
}
  0xfe   :  { %s218_s6 = scalar_lea.hbm %s292_s3, 32 }
  0xff   :  { %p219_p13 = scmp.ne.s32.totalorder %s292_s3, %s218_s6  ;;  %p222_p0 = scmp.lt.u32.totalorder %s218_s6, %s292_s3 }
 0x101   :  { %p224_p1 = pnand %p222_p0, %p219_p13 }
 0x103   :  { %227 = shalt.err (!%p224_p1)
}
 0x104   :  { %129 = dma.vmem_to_hbm [thread:$0]  %s127_s30, 32, %s292_s3, [#allocation4]  }
 0x105   :  { %230 = dma.done.wait [#allocation4], 32  }
 0x106   :  { %231 = vsyncadd [#allocation4], 4294967264 }
 0x107   :  { %133 = vsyncpa [#allocation3], 1 }
 0x108   :  { %134 = vsyncpa [#allocation4], 1 }

</bundles_post_ra>
